<compile_context>
chip_gen: v5e
topology: v5e:2x2
jax: 0.10.0
libtpu: 0.0.40
codegen_flags: <defaults>
</compile_context>

<pallas_src>
import functools
import math

import jax
import jax.numpy as jnp
from jax.experimental import pallas as pl
from jax.experimental.pallas import tpu as pltpu


# ------------------------------ budgets ------------------------------------ #
def _vmem_budget():
    """(target block bytes, vmem_limit_bytes), tuned per TPU generation."""
    try:
        vmem = int(pltpu.get_tpu_info().vmem_capacity_bytes)
    except Exception:
        vmem = 0
    if vmem >= 100 * 1024 * 1024:        # v5e / v6e class: 128 MiB physical VMEM
        return 8 * 1024 * 1024, 64 * 1024 * 1024
    # v7x class (64 MiB per TensorCore) or unknown: conservative, fits everywhere.
    return 4 * 1024 * 1024, 48 * 1024 * 1024


# ------------------------------ helpers ------------------------------------ #
def _pack_factor(S, C):
    """k such that k*C is a multiple of 128 (lane-dense) via a free reshape."""
    if C <= 0 or C % 128 == 0:
        return 1
    k = 128 // math.gcd(C, 128)
    return k if S % k == 0 else 1


def _choose_tile_rows(sp, pc, data_itemsize, min_itemsize, target_bytes, max_rows):
    """Largest sublane-aligned row tile within the per-block byte budget."""
    align = max(8, 32 // max(int(min_itemsize), 1))   # f32:8, bf16:16, int8:32
    bytes_per_row = pc * int(data_itemsize)
    cap = max(align, target_bytes // max(bytes_per_row, 1))
    if max_rows is not None:
        cap = min(cap, int(max_rows))
    cap = max(align, (cap // align) * align)
    if sp <= cap:
        return sp                        # full dim (allowed even if % align != 0)
    return cap


# ------------------------- pass 1: sequence reduction ----------------------- #
def _reduce_kernel(data_ref, obs_ref, ts_sum_ref, num_obs_ref, *,
                   sp_total, tile_sp, has_rem):
    c = pl.program_id(1)

    @pl.when(c == 0)
    def _():
        ts_sum_ref[...] = jnp.zeros_like(ts_sum_ref)
        num_obs_ref[...] = jnp.zeros_like(num_obs_ref)

    x = data_ref[...].astype(jnp.float32)        # (tile_sp, PC)
    w = obs_ref[...].astype(jnp.float32)         # native narrow dtype -> f32 in vregs

    def accumulate(xx, ww):
        ts_sum_ref[...] += jnp.sum(jnp.abs(xx * ww), axis=0, keepdims=True)
        num_obs_ref[...] += jnp.sum(ww, axis=0, keepdims=True)

    if not has_rem:
        accumulate(x, w)
    else:
        last = pl.num_programs(1) - 1

        @pl.when(c != last)
        def _():
            accumulate(x, w)

        @pl.when(c == last)
        def _():
            # Only the trailing partial chunk pays for the row mask.
            row = jax.lax.broadcasted_iota(jnp.int32, x.shape, 0) + c * tile_sp
            valid = row < sp_total
            accumulate(jnp.where(valid, x, 0.0), jnp.where(valid, w, 0.0))


def _reduce_call(dp, op, tile_sp, vmem_limit):
    B, Sp, PC = dp.shape
    n_chunks = pl.cdiv(Sp, tile_sp)
    kernel = functools.partial(_reduce_kernel, sp_total=Sp, tile_sp=tile_sp,
                               has_rem=(Sp % tile_sp != 0))
    return pl.pallas_call(
        kernel,
        out_shape=(jax.ShapeDtypeStruct((B, 1, PC), jnp.float32),
                   jax.ShapeDtypeStruct((B, 1, PC), jnp.float32)),
        grid_spec=pltpu.PrefetchScalarGridSpec(
            num_scalar_prefetch=0,
            grid=(B, n_chunks),
            in_specs=[
                pl.BlockSpec((None, tile_sp, PC), lambda b, c: (b, c, 0)),
                pl.BlockSpec((None, tile_sp, PC), lambda b, c: (b, c, 0)),
            ],
            out_specs=[
                pl.BlockSpec((None, 1, PC), lambda b, c: (b, 0, 0)),
                pl.BlockSpec((None, 1, PC), lambda b, c: (b, 0, 0)),
            ],
        ),
        compiler_params=pltpu.CompilerParams(
            dimension_semantics=("parallel", "arbitrary"),
            vmem_limit_bytes=vmem_limit),
    )(dp, op)


# --------------------------- pass 2: apply inv scale ------------------------ #
def _scale_kernel(data_ref, inv_ref, out_ref, *, compute_dtype):
    inv_s = inv_ref[...].astype(compute_dtype)   # (1, PC), read once per step
    x = data_ref[...].astype(compute_dtype)      # (tile_sp, PC)
    out_ref[...] = (x * inv_s).astype(out_ref.dtype)


def _scale_call(dp, inv_scale_p, tile_sp, vmem_limit):
    B, Sp, PC = dp.shape
    n_chunks = pl.cdiv(Sp, tile_sp)
    # bf16 multiply path for v6e/v7x (bf16 VALU); v5e widens internally.
    compute_dtype = jnp.bfloat16 if dp.dtype == jnp.bfloat16 else jnp.float32
    kernel = functools.partial(_scale_kernel, compute_dtype=compute_dtype)
    return pl.pallas_call(
        kernel,
        out_shape=jax.ShapeDtypeStruct((B, Sp, PC), dp.dtype),
        grid_spec=pltpu.PrefetchScalarGridSpec(
            num_scalar_prefetch=0,
            grid=(B, n_chunks),
            in_specs=[
                pl.BlockSpec((None, tile_sp, PC), lambda b, c: (b, c, 0)),
                pl.BlockSpec((None, 1, PC), lambda b, c: (b, 0, 0)),
            ],
            out_specs=pl.BlockSpec((None, tile_sp, PC), lambda b, c: (b, c, 0)),
        ),
        compiler_params=pltpu.CompilerParams(
            dimension_semantics=("parallel", "parallel"),
            vmem_limit_bytes=vmem_limit),
    )(dp, inv_scale_p)


# ------------------------------ module wrapper ------------------------------ #
def patch_tsmixer_mean_scaler(data, observed_indicator, *,
                              scaling_dim=None, keepdim=None,
                              minimum_scale=None, default_scale=None,
                              max_rows_per_block=None):
    """data, observed_indicator: (batch, sequence_length, num_input_channels)."""
    dim = 1 if scaling_dim is None else scaling_dim
    keepdim = True if keepdim is None else keepdim
    minimum_scale = 1e-10 if minimum_scale is None else minimum_scale
    if dim != 1:
        # TODO(synk): only the default scaling_dim=1 (sequence axis) is implemented.
        raise NotImplementedError("only scaling_dim=1 is supported")

    target_block_bytes, vmem_limit = _vmem_budget()

    B, S, C = data.shape
    k = _pack_factor(S, C)
    Sp, PC = S // k, C * k

    # Contiguous reshapes: no data movement, lane-dense last dim when possible.
    dp = data.reshape(B, Sp, PC)
    obs = observed_indicator
    if obs.dtype == jnp.bool_:
        obs = obs.astype(jnp.int8)           # Pallas-friendly narrow dtype
    op = obs.reshape(B, Sp, PC)

    data_itemsize = jnp.dtype(dp.dtype).itemsize
    min_itemsize = min(data_itemsize, jnp.dtype(op.dtype).itemsize)
    tile_sp = _choose_tile_rows(Sp, PC, data_itemsize, min_itemsize,
                                target_block_bytes, max_rows_per_block)

    # Pass 1: sequence reduction (accumulated across chunks in VMEM).
    ts_sum_p, num_obs_p = _reduce_call(dp, op, tile_sp, vmem_limit)

    # Fold packed lane groups back to per-channel totals (tiny (B, k, C) sum).
    ts_sum = ts_sum_p.reshape(B, k, C).sum(axis=1)       # (B, C) f32
    num_obs = num_obs_p.reshape(B, k, C).sum(axis=1)     # (B, C) f32

    # Tiny per-(batch, channel) scale finalization -- plain jnp (O(B*C)).
    scale = ts_sum / jnp.maximum(num_obs, 1.0)
    if default_scale is None:
        batch_sum = jnp.sum(ts_sum, axis=0)
        batch_obs = jnp.maximum(jnp.sum(num_obs, axis=0), 1.0)
        default = jnp.broadcast_to(batch_sum / batch_obs, scale.shape)
    else:
        default = jnp.full_like(scale, default_scale)
    scale = jnp.where(num_obs > 0, scale, default)
    scale = jnp.maximum(scale, minimum_scale)            # (B, C) f32

    # Precompute reciprocal once; pass 2 becomes a pure multiply.
    inv_scale = 1.0 / scale                               # (B, C) f32
    inv_scale_p = jnp.tile(inv_scale, (1, k)).reshape(B, 1, PC)

    # Pass 2: scaled_data = data * (1/scale).
    scaled = _scale_call(dp, inv_scale_p, tile_sp, vmem_limit).reshape(B, S, C)

    scale = scale.astype(data.dtype)
    scale_out = scale.reshape(B, 1, C) if keepdim else scale
    loc = jnp.zeros_like(scale_out)
    return scaled, loc, scale_out


# --------------------------------- reference -------------------------------- #
def _ref(data, observed, minimum_scale, default_scale, keepdim):
    x = data.astype(jnp.float32)
    w = observed.astype(jnp.float32)
    ts_sum = jnp.sum(jnp.abs(x * w), axis=1, keepdims=True)
    num_obs = jnp.sum(w, axis=1, keepdims=True)
    scale = ts_sum / jnp.maximum(num_obs, 1.0)
    if default_scale is None:
        batch_sum = jnp.sum(ts_sum, axis=0)
        batch_obs = jnp.maximum(jnp.sum(num_obs, axis=0), 1.0)
        default = batch_sum / batch_obs
    else:
        default = default_scale * jnp.ones_like(scale)
    scale = jnp.where(num_obs > 0, scale, default)
    scale = jnp.maximum(scale, minimum_scale)
    scaled = x / scale
    if not keepdim:
        scale = jnp.squeeze(scale, axis=1)
    return scaled, jnp.zeros_like(scale), scale


if __name__ == "__main__":
    key = jax.random.PRNGKey(0)

    def run_case(k_case, B, S, C, *, data_dtype=jnp.float32, bool_indicator=False,
                 keepdim=True, default_scale=None, max_rows=None,
                 atol=1e-5, rtol=1e-5):
        kx, km = jax.random.split(k_case)
        data = jax.random.normal(kx, (B, S, C), dtype=jnp.float32)
        observed = (jax.random.uniform(km, (B, S, C)) > 0.2).astype(jnp.float32)
        # One fully-unobserved (batch, channel) series to exercise the
        # default-scale substitution.
        observed = observed.at[0, :, 0].set(0.0)
        data = data.astype(data_dtype)
        obs_in = observed.astype(jnp.bool_) if bool_indicator else observed

        out = patch_tsmixer_mean_scaler(
            data, obs_in, keepdim=keepdim, default_scale=default_scale,
            max_rows_per_block=max_rows)
        out = jax.block_until_ready(out)
        ref = _ref(data, observed, 1e-10, default_scale, keepdim)

        ok = True
        for o, r in zip(out, ref):
            ok = ok and (o.shape == r.shape)
            ok = ok and bool(jnp.allclose(o.astype(jnp.float32), r,
                                          atol=atol, rtol=rtol))
        return ok

    k1, k2, k3 = jax.random.split(key, 3)
    # 1) Lane-packed path (C=32 -> k=4, PC=128), single chunk, batch default.
    ok = run_case(k1, 4, 256, 32, keepdim=True, default_scale=None)
    # 2) Generalized packing (C=48 -> k=8, PC=384), forced multi-chunk reduction
    #    with a masked remainder block, constant default_scale, keepdim=False.
    ok = ok and run_case(k2, 2, 200, 48, keepdim=False, default_scale=2.0,
                         max_rows=8)
    # 3) bf16 data + bool (int8) indicator: native narrow streaming and the
    #    bf16 multiply path in pass 2.
    ok = ok and run_case(k3, 2, 128, 32, data_dtype=jnp.bfloat16,
                         bool_indicator=True, keepdim=True,
                         atol=3e-2, rtol=3e-2)

    if ok:
        print("KERNEL_OK")
</pallas_src>

<mosaic_0001>
module attributes {stable_mosaic.version = 11 : i64} {
  func.func @_reduce_kernel(%arg0: i32, %arg1: i32, %arg2: memref<1x64x128xf32, #tpu.memory_space<vmem>>, %arg3: memref<1x64x128xf32, #tpu.memory_space<vmem>>, %arg4: memref<1x1x128xf32, #tpu.memory_space<vmem>>, %arg5: memref<1x1x128xf32, #tpu.memory_space<vmem>>) attributes {dimension_semantics = [#tpu.dimension_semantics<parallel>, #tpu.dimension_semantics<arbitrary>], iteration_bounds = array<i64: 4, 1>, scalar_prefetch = 0 : i64, scratch_operands = 0 : i64, tpu.core_type = #tpu.core_type<tc>, window_params = [{transform_indices = @transform_0, window_bounds = array<i64: 1, 64, 128>}, {transform_indices = @transform_1, window_bounds = array<i64: 1, 64, 128>}, {transform_indices = @transform_2, window_bounds = array<i64: 1, 1, 128>}, {transform_indices = @transform_3, window_bounds = array<i64: 1, 1, 128>}]} {
    %c0_i32 = arith.constant 0 : i32
    %0 = arith.cmpi eq, %arg1, %c0_i32 : i32
    %1 = arith.extui %0 : i1 to i32
    %c0_i32_0 = arith.constant 0 : i32
    %2 = arith.cmpi ne, %1, %c0_i32_0 : i32
    scf.if %2 {
      %cst_19 = arith.constant 0.000000e+00 : f32
      %25 = vector.broadcast %cst_19 : f32 to vector<1x128xf32>
      %c0_20 = arith.constant 0 : index
      %c0_21 = arith.constant 0 : index
      %c0_22 = arith.constant 0 : index
      %26 = vector.load %arg4[%c0_20, %c0_21, %c0_22] : memref<1x1x128xf32, #tpu.memory_space<vmem>>, vector<1x1x128xf32>
      %27 = vector.shape_cast %26 : vector<1x1x128xf32> to vector<1x128xf32>
      %28 = vector.shape_cast %25 : vector<1x128xf32> to vector<1x1x128xf32>
      tpu.vector_store %arg4[%c0_20, %c0_21, %c0_22], %28 {strides = array<i32>} : memref<1x1x128xf32, #tpu.memory_space<vmem>>, vector<1x1x128xf32>,
      %cst_23 = arith.constant 0.000000e+00 : f32
      %29 = vector.broadcast %cst_23 : f32 to vector<1x128xf32>
      %c0_24 = arith.constant 0 : index
      %c0_25 = arith.constant 0 : index
      %c0_26 = arith.constant 0 : index
      %30 = vector.load %arg5[%c0_24, %c0_25, %c0_26] : memref<1x1x128xf32, #tpu.memory_space<vmem>>, vector<1x1x128xf32>
      %31 = vector.shape_cast %30 : vector<1x1x128xf32> to vector<1x128xf32>
      %32 = vector.shape_cast %29 : vector<1x128xf32> to vector<1x1x128xf32>
      tpu.vector_store %arg5[%c0_24, %c0_25, %c0_26], %32 {strides = array<i32>} : memref<1x1x128xf32, #tpu.memory_space<vmem>>, vector<1x1x128xf32>,
    } else {
    }
    %c0 = arith.constant 0 : index
    %c0_1 = arith.constant 0 : index
    %c0_2 = arith.constant 0 : index
    %3 = vector.load %arg2[%c0, %c0_1, %c0_2] : memref<1x64x128xf32, #tpu.memory_space<vmem>>, vector<1x64x128xf32>
    %4 = vector.shape_cast %3 : vector<1x64x128xf32> to vector<64x128xf32>
    %c0_3 = arith.constant 0 : index
    %c0_4 = arith.constant 0 : index
    %c0_5 = arith.constant 0 : index
    %5 = vector.load %arg3[%c0_3, %c0_4, %c0_5] : memref<1x64x128xf32, #tpu.memory_space<vmem>>, vector<1x64x128xf32>
    %6 = vector.shape_cast %5 : vector<1x64x128xf32> to vector<64x128xf32>
    %c0_6 = arith.constant 0 : index
    %c0_7 = arith.constant 0 : index
    %c0_8 = arith.constant 0 : index
    %7 = vector.load %arg4[%c0_6, %c0_7, %c0_8] : memref<1x1x128xf32, #tpu.memory_space<vmem>>, vector<1x1x128xf32>
    %8 = vector.shape_cast %7 : vector<1x1x128xf32> to vector<1x128xf32>
    %9 = arith.mulf %4, %6 : vector<64x128xf32>
    %10 = math.absf %9 : vector<64x128xf32>
    %cst = arith.constant dense<0.000000e+00> : vector<128xf32>
    %11 = vector.multi_reduction <add>, %10, %cst [0] : vector<64x128xf32> to vector<128xf32>
    %12 = vector.shape_cast %11 : vector<128xf32> to vector<1x128xf32>
    %13 = arith.addf %8, %12 : vector<1x128xf32>
    %c0_9 = arith.constant 0 : index
    %c0_10 = arith.constant 0 : index
    %c0_11 = arith.constant 0 : index
    %14 = vector.load %arg4[%c0_9, %c0_10, %c0_11] : memref<1x1x128xf32, #tpu.memory_space<vmem>>, vector<1x1x128xf32>
    %15 = vector.shape_cast %14 : vector<1x1x128xf32> to vector<1x128xf32>
    %16 = vector.shape_cast %13 : vector<1x128xf32> to vector<1x1x128xf32>
    tpu.vector_store %arg4[%c0_9, %c0_10, %c0_11], %16 {strides = array<i32>} : memref<1x1x128xf32, #tpu.memory_space<vmem>>, vector<1x1x128xf32>,
    %c0_12 = arith.constant 0 : index
    %c0_13 = arith.constant 0 : index
    %c0_14 = arith.constant 0 : index
    %17 = vector.load %arg5[%c0_12, %c0_13, %c0_14] : memref<1x1x128xf32, #tpu.memory_space<vmem>>, vector<1x1x128xf32>
    %18 = vector.shape_cast %17 : vector<1x1x128xf32> to vector<1x128xf32>
    %cst_15 = arith.constant dense<0.000000e+00> : vector<128xf32>
    %19 = vector.multi_reduction <add>, %6, %cst_15 [0] : vector<64x128xf32> to vector<128xf32>
    %20 = vector.shape_cast %19 : vector<128xf32> to vector<1x128xf32>
    %21 = arith.addf %18, %20 : vector<1x128xf32>
    %c0_16 = arith.constant 0 : index
    %c0_17 = arith.constant 0 : index
    %c0_18 = arith.constant 0 : index
    %22 = vector.load %arg5[%c0_16, %c0_17, %c0_18] : memref<1x1x128xf32, #tpu.memory_space<vmem>>, vector<1x1x128xf32>
    %23 = vector.shape_cast %22 : vector<1x1x128xf32> to vector<1x128xf32>
    %24 = vector.shape_cast %21 : vector<1x128xf32> to vector<1x1x128xf32>
    tpu.vector_store %arg5[%c0_16, %c0_17, %c0_18], %24 {strides = array<i32>} : memref<1x1x128xf32, #tpu.memory_space<vmem>>, vector<1x1x128xf32>,
    return
  }
  func.func @transform_0(%arg0: i32, %arg1: i32) -> (i32, i32, i32) {
    %c0_i32 = arith.constant 0 : i32
    %c0_i32_0 = arith.constant 0 : i32
    return %arg0, %arg1, %c0_i32 : i32, i32, i32
  }
  func.func @transform_1(%arg0: i32, %arg1: i32) -> (i32, i32, i32) {
    %c0_i32 = arith.constant 0 : i32
    %c0_i32_0 = arith.constant 0 : i32
    return %arg0, %arg1, %c0_i32 : i32, i32, i32
  }
  func.func @transform_2(%arg0: i32, %arg1: i32) -> (i32, i32, i32) {
    %c0_i32 = arith.constant 0 : i32
    %c0_i32_0 = arith.constant 0 : i32
    %c0_i32_1 = arith.constant 0 : i32
    return %arg0, %c0_i32, %c0_i32_0 : i32, i32, i32
  }
  func.func @transform_3(%arg0: i32, %arg1: i32) -> (i32, i32, i32) {
    %c0_i32 = arith.constant 0 : i32
    %c0_i32_0 = arith.constant 0 : i32
    %c0_i32_1 = arith.constant 0 : i32
    return %arg0, %c0_i32, %c0_i32_0 : i32, i32, i32
  }
}

</mosaic_0001>

<bundles_post_ra>
// kernel: tpu_custom_call.1
= control target key start
LH: loop header
LB: loop body
LE: loop exit
PB: predicated region body
PF: predicated region fallthrough
CT: control target
= control target key end

     0   :  { %s991_s0 = inlined_call_operand.hbm [shape: f32[4,64,128], index: 0, kind: input, shape index: {}]   ;;  %s992_s1 = inlined_call_operand.hbm [shape: f32[4,64,128], index: 1, kind: input, shape index: {}]   ;;  %s993_s2 = inlined_call_operand.hbm [shape: f32[4,1,128], index: 2, kind: output, shape index: {0}]   ;;  %s994_s3 = inlined_call_operand.hbm [shape: f32[4,1,128], index: 3, kind: output, shape index: {1}]  }
   0x1   :  { %995 = sst [smem:[#allocation14_spill]] %s991_s0 }
   0x2   :  { %9 = vsyncpa [#allocation3], 0 }
   0x3   :  { %11 = vsyncpa [#allocation3 + $0x1], 0 }
   0x4   :  { %12 = vsyncpa [#allocation6], 0 }
   0x5   :  { %14 = vsyncpa [#allocation6 + $0x1], 0 }
   0x6   :  { %15 = vsyncpa [#allocation4], 0 }
   0x7   :  { %17 = vsyncpa [#allocation4 + $0x1], 0 }
   0x8   :  { %18 = vsyncpa [#allocation9], 0 }
   0x9   :  { %20 = vsyncpa [#allocation9 + $0x1], 0  ;;  %s790_s12 = smov 0   ;;  %s792_s13 = smov 0  }
   0xa   :  { %s794_s14 = smov 0   ;;  %s796_s15 = smov 0  }
   0xb   :  { %s798_s16 = smov 0   ;;  %s800_s17 = smov 0  }
   0xc LB: > { %s495_s18 = sadd.s32 4294967295, %s765_s17   ;;  %s496_s19 = sadd.s32 4294967294, %s765_s17   ;;  %s765_s17 = sphi %s800_s17, %s26_s17   ;;  %s761_s16 = sphi %s798_s16, %s1006_s16   ;;  %s757_s15 = sphi %s796_s15, %s1005_s15   ;;  %s753_s14 = sphi %s794_s14, %s1004_s14   ;;  %s749_s13 = sphi %s792_s13, %s1003_s13   ;;  %s745_s12 = sphi %s790_s12, %s1002_s12  }
   0xd   : > { %s38_s20 = sadd.s32 1, %s761_s16  ;;  %s47_s21 = sadd.s32 1, %s753_s14 }
   0xe   : > { %p40_p0 = scmp.ge.s32.totalorder %s38_s20, 4  ;;  %p54_p1 = scmp.ne.s32.totalorder %s753_s14, %s749_s13 }
   0xf   : > { %p55_p2 = scmp.eq.s32.totalorder %s765_s17, 0  ;;  %p60_p3 = scmp.ne.s32.totalorder %s749_s13, %s745_s12 }
  0x10   : > { %s1008_s20 = smov (%p40_p0, %s38_s20), 0  ;;  %p61_p5 = scmp.eq.s32.totalorder %s495_s18, 0 }
  0x11   : > { %p831_p4 = por %p55_p2, %p54_p1  ;;  %s42_s23 = ssub.s32 %s761_s16, %s1008_s20 }
  0x12   : > { %p112_p6 = scmp.eq.s32.totalorder %s495_s18, 3  ;;  %p45_p7 = scmp.eq.s32.totalorder %s42_s23, 0 }
  0x13   : > { %p837_p8 = por %p61_p5, %p60_p3  ;;  %p118_p10 = scmp.eq.s32.totalorder %s496_s19, 3 }
  0x14   : > { %p841_p9 = por %p112_p6, %p54_p1  ;;  %p534_p12 = scmp.lt.s32.totalorder %s765_s17, 4 }
  0x15   : > { %s846_s26 = scalar_select %p45_p7, %s753_s14, %s47_s21  }
  0x16   : > { %p848_p11 = por %p118_p10, %p60_p3  ;;  %s854_s28 = sand.u32 1, %s753_s14  }
  0x17   : > { %s499_s29 = sshll.u32 %s854_s28, 6  ;;  %s510_s30 = sshll.u32 %s761_s16, 6 }
  0x18   : > { %s1000_s0 = sld [smem:[#allocation14_spill]]  ;;  %s168_s7 = scalar_lea.vmem [#allocation2], %s499_s29 }
  0x19   : > { %s178_s8 = sshll.u32 %s168_s7, 4  ;;  %p863_p13 = pnand %p534_p12, %p831_p4  ;;  %s179_s8 = int_to_ptr.vmem [resolvable:$true] %s178_s8 }
  0x1a   : > { %p505_p0 = scmp.ge.s32.totalorder %s765_s17, 1  ;;  %s165_s11 = scalar_lea.sflag [#allocation3], %s854_s28 }
  0x1b   : > { %s767_s18 = smov 128   ;;  %s768_s19 = smov 8  }
  0x1c   : > { %p210_p1 = scmp.lt.s32.totalorder %s765_s17, 5  ;;  %s199_s4 = scalar_lea.hbm %s992_s1, %s510_s30 }
  0x1d   : > { %s200_s5 = sshll.u32 %s199_s4, 4  ;;  %s192_s22 = scalar_lea.vmem [#allocation5], %s499_s29  ;;  %s201_s5 = int_to_ptr.hbm [resolvable:$true] %s200_s5 }
  0x1e   : > { %s175_s6 = scalar_lea.hbm %s1000_s0, %s510_s30  ;;  %p211_p2 = pnand %p505_p0, %p210_p1 }
  0x1f   : > { %s176_s9 = sshll.u32 %s175_s6, 4  ;;  %s202_s6 = sshll.u32 %s192_s22, 4  ;;  %s177_s9 = int_to_ptr.hbm [resolvable:$true] %s176_s9  ;;  %s203_s6 = int_to_ptr.vmem [resolvable:$true] %s202_s6 }
  0x20   : > { %523 = dma.hbm_to_vmem [thread:$0]  (!%p863_p13), %s177_s9, 1024, %s179_s8, %s165_s11, %s767_s18, %s767_s18, %s768_s19  }
  0x21   : > { %s189_s7 = scalar_lea.sflag [#allocation6], %s854_s28  ;;  %214 = sbr.rel (%p211_p2) target bundleno = 89 (0x59), region = 28 }
  0x22   : > { %526 = dma.hbm_to_vmem [thread:$0]  (!%p863_p13), %s201_s5, 1024, %s203_s6, %s189_s7, %s767_s18, %s767_s18, %s768_s19  }
  0x23   : > { %s879_s0 = sand.u32 (!%p211_p2), 1, %s749_s13  }
  0x24   : > { %s506_s8 = sshll.u32 (!%p211_p2), %s879_s0, 6  ;;  %s217_s9 = scalar_lea.sflag (!%p211_p2), [#allocation3], %s879_s0 }
  0x25   : > { %s883_s11 = scalar_lea.vmem (!%p211_p2), [#allocation2], %s506_s8 }
  0x26   : > { %728 = dma.done.wait (%p837_p8), %s217_s9, 1024  }
  0x27   : > { %730 = vsyncadd (%p837_p8), %s217_s9, 4294966272  ;;  %s227_s28 = scalar_lea.sflag [#allocation6], %s879_s0  ;;  %s890_s29 = scalar_lea.vmem [#allocation5], %s506_s8 }
  0x28   : > { %732 = dma.done.wait (%p837_p8), %s227_s28, 1024  }
  0x29   : > { %734 = vsyncadd (%p837_p8), %s227_s28, 4294966272  ;;  %s897_s30 = scalar_lea.vmem [#allocation7], %s879_s0  ;;  %v769_v0 = vmov 0.0   ;;  %s901_s10 = scalar_lea.vmem [#allocation8], %s879_s0  ;;  %v270_v1 = vld [vmem:[%s883_s11] sm:$0xff]  ;;  %v271_v2 = vld [vmem:[%s883_s11 + $0x8] sm:$0xff] }
  0x2a   : > { %268 = vst [vmem:[%s897_s30] sm:$0x1] %v769_v0  ;;  %v272_v3 = vld [vmem:[%s883_s11 + $0x10] sm:$0xff]  ;;  %v273_v4 = vld [vmem:[%s883_s11 + $0x18] sm:$0xff]  ;;  %v274_v5 = vld [vmem:[%s883_s11 + $0x20] sm:$0xff]  ;;  %s360_s19 = scalar_lea.hbm %s994_s3, %s757_s15  ;;  %s347_s4 = scalar_lea.hbm %s993_s2, %s757_s15 }
  0x2b   : > { %269 = vst [vmem:[%s901_s10] sm:$0x1] %v769_v0  ;;  %v278_v6 = vld [vmem:[%s890_s29] sm:$0xff]  ;;  %v279_v7 = vld [vmem:[%s890_s29 + $0x8] sm:$0xff]  ;;  %v280_v8 = vld [vmem:[%s890_s29 + $0x10] sm:$0xff]  ;;  %s362_s5 = sshll.u32 %s901_s10, 4  ;;  %s930_s22 = sshll.u32 %s360_s19, 4  ;;  %s363_s5 = int_to_ptr.vmem [resolvable:$true] %s362_s5  ;;  %s365_s22 = int_to_ptr.hbm [resolvable:$true] %s930_s22 }
  0x2c   : > { %v281_v9 = vld [vmem:[%s890_s29 + $0x18] sm:$0xff]  ;;  %v287_v10 = vmul.f32 %v278_v6, %v270_v1  ;;  %v282_v11 = vld [vmem:[%s890_s29 + $0x20] sm:$0xff]  ;;  %v288_v12 = vmul.f32 %v279_v7, %v271_v2  ;;  %v289_v13 = vmul.f32 %v280_v8, %v272_v3  ;;  %v319_v15 = vadd.f32 %v279_v7, %v278_v6  ;;  %v275_v16 = vld [vmem:[%s883_s11 + $0x28] sm:$0xff]  ;;  %s349_s6 = sshll.u32 %s897_s30, 4  ;;  %s933_s7 = sshll.u32 %s347_s4, 4  ;;  %s938_s6 = int_to_ptr.vmem [resolvable:$true] %s349_s6  ;;  %s352_s7 = int_to_ptr.hbm [resolvable:$true] %s933_s7 }
  0x2d   : > { %v290_v14 = vmul.f32 %v281_v9, %v273_v4  ;;  %v283_v17 = vld [vmem:[%s890_s29 + $0x28] sm:$0xff]  ;;  %v291_v19 = vmul.f32 %v282_v11, %v274_v5  ;;  %v276_v22 = vld [vmem:[%s883_s11 + $0x30] sm:$0xff]  ;;  %v277_v28 = vld [vmem:[%s883_s11 + $0x38] sm:$0xff]  ;;  %s339_s15 = scalar_lea.sflag [#allocation9], %s879_s0  ;;  %s661_s8 = sshra.s32 %s365_s22, 4  ;;  %s662_s8 = int_to_ptr.hbm [resolvable:$true] %s661_s8 }
  0x2e   : > { %v295_v18 = vand.u32 2147483647, %v287_v10  ;;  %v296_v20 = vand.u32 2147483647, %v288_v12  ;;  %v297_v21 = vand.u32 2147483647, %v289_v13  ;;  %v320_v24 = vadd.f32 %v319_v15, %v280_v8  ;;  %p668_p6 = scmp.lt.s32.totalorder %s662_s8, %s994_s3 }
  0x2f   : > { %v284_v23 = vld [vmem:[%s890_s29 + $0x30] sm:$0xff]  ;;  %v292_v25 = vmul.f32 %v283_v17, %v275_v16  ;;  %v298_v26 = vand.u32 2147483647, %v290_v14  ;;  %v285_v29 = vld [vmem:[%s890_s29 + $0x38] sm:$0xff]  ;;  %v299_v32 = vand.u32 2147483647, %v291_v19 }
  0x30   : > { %v303_v27 = vadd.f32 %v296_v20, %v295_v18  ;;  %v321_v30 = vadd.f32 %v320_v24, %v281_v9  ;;  %v293_v31 = vmul.f32 %v284_v23, %v276_v22  ;;  %v294_v35 = vmul.f32 %v285_v29, %v277_v28  ;;  %s663_s9 = scalar_lea.hbm %s662_s8, 1  ;;  %s667_s29 = scalar_lea.hbm %s994_s3, 4 }
  0x31   : > { %v300_v36 = vand.u32 2147483647, %v292_v25  ;;  %v286_v59 = vld [vmem:[%s897_s30] sm:$0x1]  ;;  %p664_p3 = scmp.ne.s32.totalorder %s662_s8, %s663_s9  ;;  %p669_p7 = scmp.lt.s32.totalorder %s667_s29, %s663_s9 }
  0x32   : > { %v304_v33 = vadd.f32 %v303_v27, %v297_v21  ;;  %v322_v34 = vadd.f32 %v321_v30, %v282_v11  ;;  %v301_v39 = vand.u32 2147483647, %v293_v31  ;;  %v302_v42 = vand.u32 2147483647, %v294_v35  ;;  %v318_v56 = vld [vmem:[%s901_s10] sm:$0x1] }
  0x33   : > { %p665_p4 = pnand %p664_p3, %p841_p9  ;;  %p670_p8 = por %p669_p7, %p668_p6 }
  0x34   : > { %v305_v37 = vadd.f32 %v304_v33, %v298_v26  ;;  %v323_v38 = vadd.f32 %v322_v34, %v283_v17 }
  0x35   : > { %p666_p5 = pneg %p665_p4 }
  0x36   : > { %v306_v40 = vadd.f32 %v305_v37, %v299_v32  ;;  %v324_v41 = vadd.f32 %v323_v38, %v284_v23 }
  0x37   : > { %p671_p10 = pnand %p670_p8, %p666_p5 }
  0x38   : > { %v307_v43 = vadd.f32 %v306_v40, %v300_v36  ;;  %v325_v44 = vadd.f32 %v324_v41, %v285_v29 }
  0x3a   : > { %v308_v45 = vadd.f32 %v307_v43, %v301_v39  ;;  %v326_v46 = vrot.slane %v325_v44, 4 }
  0x3c   : > { %v309_v47 = vadd.f32 %v308_v45, %v302_v42  ;;  %v327_v48 = vadd.f32 %v326_v46, %v325_v44 }
  0x3e   : > { %v310_v49 = vrot.slane %v309_v47, 4  ;;  %v328_v50 = vrot.slane %v327_v48, 2 }
  0x40   : > { %v311_v51 = vadd.f32 %v310_v49, %v309_v47  ;;  %v329_v52 = vadd.f32 %v328_v50, %v327_v48 }
  0x42   : > { %v312_v53 = vrot.slane %v311_v51, 2  ;;  %v330_v54 = vrot.slane %v329_v52, 1 }
  0x44   : > { %v313_v55 = vadd.f32 %v312_v53, %v311_v51  ;;  %v331_v57 = vadd.f32 %v330_v54, %v329_v52 }
  0x46   : > { %v314_v58 = vrot.slane %v313_v55, 1  ;;  %v332_v60 = vadd.f32 %v331_v57, %v318_v56 }
  0x48   : > { %v315_v61 = vadd.f32 %v314_v58, %v313_v55  ;;  %333 = vst [vmem:[%s901_s10] sm:$0x1] %v332_v60 }
  0x4a   : > { %v316_v62 = vadd.f32 %v315_v61, %v286_v59 }
  0x4b   : > { %674 = shalt.err (!%p671_p10)
}
  0x4c   : > { %517 = dma.vmem_to_hbm [thread:$0]  (%p841_p9), %s363_s5, 16, %s365_s22, %s339_s15   ;;  %317 = vst [vmem:[%s897_s30] sm:$0x1] %v316_v62 }
  0x4d   : > { %s335_s10 = scalar_lea.sflag [#allocation4], %s879_s0  ;;  %s689_s19 = sshra.s32 %s352_s7, 4  ;;  %s690_s19 = int_to_ptr.hbm [resolvable:$true] %s689_s19 }
  0x4e   : > { %s691_s21 = scalar_lea.hbm %s690_s19, 1  ;;  %s695_s8 = scalar_lea.hbm %s993_s2, 4 }
  0x4f   : > { %p692_p12 = scmp.ne.s32.totalorder %s690_s19, %s691_s21  ;;  %p696_p1 = scmp.lt.s32.totalorder %s690_s19, %s993_s2 }
  0x50   : > { %p697_p2 = scmp.lt.s32.totalorder %s695_s8, %s691_s21 }
  0x51   : > { %p693_p13 = pnand %p692_p12, %p841_p9 }
  0x52   : > { %p698_p3 = por %p697_p2, %p696_p1 }
  0x53   : > { %p694_p0 = pneg %p693_p13 }
  0x55   : > { %p699_p4 = pnand %p698_p3, %p694_p0 }
  0x57   : > { %702 = shalt.err (!%p699_p4)
}
  0x58   : > { %516 = dma.vmem_to_hbm [thread:$0]  (%p841_p9), %s938_s6, 16, %s352_s7, %s335_s10  }
  0x59 PF: > { %p535_p5 = scmp.ge.s32.totalorder %s765_s17, 2  ;;  %s376_s0 = sand.u32 1, %s745_s12  }
  0x5a   : > { %s377_s30 = scalar_lea.sflag [#allocation4], %s376_s0 }
  0x5b   : > { %p528_p6 = pnand %p535_p5, %p848_p11 }
  0x5d   : > { %p529_p7 = pneg %p528_p6 }
  0x5f   : > { %736 = dma.done.wait (%p529_p7), %s377_s30, 16  }
  0x60   : > { %738 = vsyncadd (%p529_p7), %s377_s30, 4294967280  ;;  %s386_s5 = scalar_lea.sflag [#allocation9], %s376_s0 }
  0x61   : > { %740 = dma.done.wait (%p529_p7), %s386_s5, 16  }
  0x62   : > { %742 = vsyncadd (%p529_p7), %s386_s5, 4294967280  ;;  %s26_s17 = sadd.s32 1, %s765_s17   ;;  %s1002_s12 = smov %s749_s13 }
  0x63   : > { %p23_p8 = scmp.ge.s32.totalorder %s26_s17, 6   ;;  %s1003_s13 = smov %s753_s14 }
  0x64   : > { %s1004_s14 = smov %s846_s26  ;;  %s1005_s15 = smov %s761_s16 }
  0x65   : > { %s1006_s16 = smov %s1008_s20  ;;  %25 = sbr.rel (!%p23_p8) target bundleno = 12 (0xc), region = 107 }
  0x6a   :  { %391 = vsyncpa [#allocation3], 1 }
  0x6b   :  { %393 = vsyncpa [#allocation3 + $0x1], 1 }
  0x6c   :  { %394 = vsyncpa [#allocation6], 1 }
  0x6d   :  { %396 = vsyncpa [#allocation6 + $0x1], 1 }
  0x6e   :  { %397 = vsyncpa [#allocation4], 1 }
  0x6f   :  { %399 = vsyncpa [#allocation4 + $0x1], 1 }
  0x70   :  { %400 = vsyncpa [#allocation9], 1 }
  0x71   :  { %402 = vsyncpa [#allocation9 + $0x1], 1 }

</bundles_post_ra>
